<compile_context>
chip_gen: v7x
topology: tpu7x:2x2x1
jax: 0.10.0
libtpu: 0.0.40
codegen_flags: <defaults>
</compile_context>

<pallas_src>
import jax
import jax.numpy as jnp
from jax.experimental import pallas as pl
from jax.experimental.pallas import tpu as pltpu


def _round_up(v, m):
    return ((v + m - 1) // m) * m


def _vmem_capacity_bytes():
    try:
        return int(pltpu.get_tpu_info().vmem_capacity_bytes)
    except Exception:
        return 64 << 20  # conservative (v7x per-TC VMEM)


def _choose_th(H, target):
    """Largest multiple of 128 that divides H and is <= target (H if H%128!=0)."""
    if H % 128 != 0:
        return H
    t = min(max(128, (int(target) // 128) * 128), H)
    while H % t != 0:
        t -= 128
    return t


# ---------------------------------------------------------------------------
# Kernels
# ---------------------------------------------------------------------------

def _swiglu_acc_kernel(x_ref, w1_ref, w2_ref, wp_ref, o_ref, acc_ref):
    # x_ref:  (tm, C)   token tile (compute dtype)
    # w1_ref: (C, th)   ln_1 weight H-tile (pre-blocked, leading H-block squeezed)
    # w2_ref: (C, th)   ln_2 weight H-tile
    # wp_ref: (th, C)   c_proj weight H-tile
    # o_ref:  (tm, C)   output tile
    # acc_ref:(tm, C)   f32 VMEM accumulator, persistent across the H axis
    h = pl.program_id(1)

    @pl.when(h == 0)
    def _():
        acc_ref[...] = jnp.zeros_like(acc_ref)

    x = x_ref[...]
    h1 = jnp.dot(x, w1_ref[...], preferred_element_type=jnp.float32)
    h2 = jnp.dot(x, w2_ref[...], preferred_element_type=jnp.float32)
    # SwiGLU gate in f32 on VPU/EUP: h1 * (h2 * sigmoid(h2)).
    gated = h1 * (h2 * jax.nn.sigmoid(h2))
    acc_ref[...] += jnp.dot(gated.astype(wp_ref.dtype), wp_ref[...],
                            preferred_element_type=jnp.float32)

    @pl.when(h == pl.num_programs(1) - 1)
    def _():
        o_ref[...] = acc_ref[...].astype(o_ref.dtype)


def _swiglu_single_kernel(x_ref, w1_ref, w2_ref, wp_ref, o_ref):
    # Single H step (th == H): no accumulator scratch, write output directly.
    x = x_ref[...]
    h1 = jnp.dot(x, w1_ref[...], preferred_element_type=jnp.float32)
    h2 = jnp.dot(x, w2_ref[...], preferred_element_type=jnp.float32)
    gated = h1 * (h2 * jax.nn.sigmoid(h2))
    out = jnp.dot(gated.astype(wp_ref.dtype), wp_ref[...],
                  preferred_element_type=jnp.float32)
    o_ref[...] = out.astype(o_ref.dtype)


# ---------------------------------------------------------------------------
# Wrapper
# ---------------------------------------------------------------------------

def prepare_swiglu_weights(w1_t, w2_t, wp_t, th, compute_dtype):
    """Cast + block weights along H for contiguous per-tile DMAs.

    In a real model, call this ONCE (outside the forward hot path) and keep the
    blocked, compute-dtype weights resident; re-casting / re-blocking per call
    costs an extra full HBM pass over the weights.
    """
    C, H = w1_t.shape
    nh = H // th
    w1b = w1_t.astype(compute_dtype).reshape(C, nh, th).transpose(1, 0, 2)  # (nh, C, th)
    w2b = w2_t.astype(compute_dtype).reshape(C, nh, th).transpose(1, 0, 2)  # (nh, C, th)
    wpb = wp_t.astype(compute_dtype).reshape(nh, th, C)                     # (nh, th, C)
    return w1b, w2b, wpb


def expert_moe_swiglu(x, w1_t, w2_t, wp_t, *, tm=None, th=None,
                      compute_dtype=None):
    """SwiGLU expert MLP:  c_proj( ln_1(x) * silu(ln_2(x)) ).

    x:    (B, T, C)
    w1_t: (C, H)  ln_1 weight, transposed vs. PyTorch's (out, in)
    w2_t: (C, H)  ln_2 weight, transposed
    wp_t: (H, C)  c_proj weight, transposed
    Returns (B, T, C) in x.dtype.
    """
    B, T, C = x.shape
    Cw, H = w1_t.shape
    assert Cw == C and w2_t.shape == (C, H) and wp_t.shape == (H, C)

    # bf16 MXU operands by default for f32 inputs (f32 accumulation is kept).
    if compute_dtype is None:
        compute_dtype = jnp.bfloat16 if x.dtype == jnp.float32 else x.dtype
    compute_dtype = jnp.dtype(compute_dtype)

    M = B * T
    elt_w = compute_dtype.itemsize
    elt_x = compute_dtype.itemsize
    elt_o = jnp.dtype(x.dtype).itemsize

    # ---- chip-aware VMEM budget (no hard 56 MiB clamp on 128-MiB chips).
    vmem_cap = _vmem_capacity_bytes()
    vmem_budget = int(vmem_cap * 0.85)
    big_vmem = vmem_cap >= (96 << 20)  # v5e / v6e (128 MiB) vs v7x (64 MiB)

    # ---- hidden tile: multiple of 128 lanes that divides H (else full H).
    th_target = th if th is not None else (1024 if big_vmem else 512)
    th_sel = _choose_th(H, th_target)

    # ---- token tile: multiple of 8 sublanes; big by default, clamped for
    #      small M, then shrunk (with th) to fit the VMEM budget.
    tm_target = tm if tm is not None else (1024 if big_vmem else 512)
    tm_sel = max(8, min(int(tm_target), _round_up(M, 8)))
    tm_sel = _round_up(tm_sel, 8)

    def _footprint(tm_, th_):
        nh_ = H // th_
        wtiles = 2 * (2 * C * th_ + th_ * C) * elt_w          # w1,w2,wp double-buffered
        xtiles = 2 * tm_ * C * elt_x + 2 * tm_ * C * elt_o    # x + out double-buffered
        acc = tm_ * C * 4 if nh_ > 1 else 0                   # f32 accumulator scratch
        interm = 3 * tm_ * th_ * 4 + tm_ * th_ * elt_w + tm_ * C * 4
        return wtiles + xtiles + acc + interm

    while _footprint(tm_sel, th_sel) > vmem_budget:
        if H % 128 == 0 and th_sel > 128:
            th_sel = _choose_th(H, th_sel - 128)
        elif tm_sel > 8:
            tm_sel = max(8, _round_up(tm_sel // 2, 8))
        else:
            break

    nh = H // th_sel
    Mp = _round_up(M, tm_sel)

    # ---- guarantee >= 2 M-tiles when possible so the "parallel" axis can
    #      shard across v7x's two TensorCores (negligible cost on 1-TC chips).
    if Mp // tm_sel < 2 and M > 8:
        tm_sel = _round_up((M + 1) // 2, 8)
        Mp = 2 * tm_sel

    x2d = x.reshape(M, C).astype(compute_dtype)
    if Mp != M:
        x2d = jnp.pad(x2d, ((0, Mp - M), (0, 0)))  # zero rows -> zero outputs

    # NOTE: for repeated calls, pre-compute these once and pass blocked
    # compute-dtype weights; doing it per call adds an HBM pass over weights.
    w1b, w2b, wpb = prepare_swiglu_weights(w1_t, w2_t, wp_t, th_sel, compute_dtype)

    grid = (Mp // tm_sel, nh)

    vmem_limit = int(min(max(_footprint(tm_sel, th_sel) + (4 << 20), 32 << 20),
                         vmem_budget))

    # Real traffic: x in + out out once, weights re-streamed once per M tile.
    num_m_tiles = Mp // tm_sel
    cost = pl.CostEstimate(
        flops=6 * M * C * H,               # three (M,C,H)-shaped matmuls
        transcendentals=M * H,             # sigmoid
        bytes_accessed=(M * C * elt_x + M * C * elt_o
                        + num_m_tiles * 3 * C * H * elt_w),
    )

    in_specs = [
        pl.BlockSpec((tm_sel, C), lambda i, h: (i, 0)),        # token tile
        pl.BlockSpec((None, C, th_sel), lambda i, h: (h, 0, 0)),  # W1^T H-block
        pl.BlockSpec((None, C, th_sel), lambda i, h: (h, 0, 0)),  # W2^T H-block
        pl.BlockSpec((None, th_sel, C), lambda i, h: (h, 0, 0)),  # Wproj^T H-block
    ]
    out_spec = pl.BlockSpec((tm_sel, C), lambda i, h: (i, 0))

    if nh == 1:
        kernel = _swiglu_single_kernel
        scratch_shapes = []
    else:
        kernel = _swiglu_acc_kernel
        scratch_shapes = [pltpu.VMEM((tm_sel, C), jnp.float32)]

    out2d = pl.pallas_call(
        kernel,
        out_shape=jax.ShapeDtypeStruct((Mp, C), x.dtype),
        grid_spec=pltpu.PrefetchScalarGridSpec(
            num_scalar_prefetch=0,
            grid=grid,
            in_specs=in_specs,
            out_specs=out_spec,
            scratch_shapes=scratch_shapes,
        ),
        compiler_params=pltpu.CompilerParams(
            dimension_semantics=("parallel", "arbitrary"),
            vmem_limit_bytes=vmem_limit,
        ),
        cost_estimate=cost,
    )(x2d, w1b, w2b, wpb)

    return out2d[:M].reshape(B, T, C)


# ---------------------------------------------------------------------------
# Demo / correctness check
# ---------------------------------------------------------------------------

if __name__ == "__main__":
    # Small but lane-dense config: n_embd=128 -> hidden_dim=512.
    B, T, n_embd = 2, 8, 128
    hidden_dim = 4 * n_embd

    key = jax.random.PRNGKey(0)
    kx, k1, k2, k3 = jax.random.split(key, 4)

    x = jax.random.normal(kx, (B, T, n_embd), dtype=jnp.float32)
    # PyTorch nn.Linear weights are (out, in); we pass them transposed.
    w1 = 0.02 * jax.random.normal(k1, (hidden_dim, n_embd), dtype=jnp.float32)
    w2 = 0.02 * jax.random.normal(k2, (hidden_dim, n_embd), dtype=jnp.float32)
    wp = 0.02 * jax.random.normal(k3, (n_embd, hidden_dim), dtype=jnp.float32)

    # Pure-JAX reference (PyTorch semantics: y = x @ W.T).
    h1_ref = x @ w1.T
    h2_ref = x @ w2.T
    ref = (h1_ref * (h2_ref * jax.nn.sigmoid(h2_ref))) @ wp.T

    # f32 MXU path with th=256 (2 H-steps -> exercises the accumulator kernel).
    out_f32 = expert_moe_swiglu(x, w1.T, w2.T, wp.T,
                                compute_dtype=jnp.float32, th=256)
    out_f32 = jax.block_until_ready(out_f32)
    assert out_f32.shape == (B, T, n_embd)
    assert jnp.allclose(out_f32, ref, atol=2e-3, rtol=2e-3), \
        float(jnp.max(jnp.abs(out_f32 - ref)))

    # Default path: bf16 MXU operands, f32 accumulation, single-H-step kernel.
    out_bf16 = expert_moe_swiglu(x, w1.T, w2.T, wp.T)
    out_bf16 = jax.block_until_ready(out_bf16)
    assert out_bf16.shape == (B, T, n_embd)
    assert bool(jnp.all(jnp.isfinite(out_bf16)))
    assert jnp.allclose(out_bf16, ref, atol=5e-3, rtol=5e-2), \
        float(jnp.max(jnp.abs(out_bf16 - ref)))

    print("KERNEL_OK")
</pallas_src>

<mosaic_0001>
module attributes {stable_mosaic.version = 11 : i64} {
  func.func @_swiglu_acc_kernel(%arg0: i32, %arg1: i32, %arg2: memref<8x128xf32, #tpu.memory_space<vmem>>, %arg3: memref<1x128x256xf32, #tpu.memory_space<vmem>>, %arg4: memref<1x128x256xf32, #tpu.memory_space<vmem>>, %arg5: memref<1x256x128xf32, #tpu.memory_space<vmem>>, %arg6: memref<8x128xf32, #tpu.memory_space<vmem>>, %arg7: memref<8x128xf32, #tpu.memory_space<vmem>>) attributes {dimension_semantics = [#tpu.dimension_semantics<parallel>, #tpu.dimension_semantics<arbitrary>], iteration_bounds = array<i64: 2, 2>, scalar_prefetch = 0 : i64, scratch_operands = 1 : i64, tpu.core_type = #tpu.core_type<tc>, window_params = [{transform_indices = @transform_0, window_bounds = array<i64: 8, 128>}, {transform_indices = @transform_1, window_bounds = array<i64: 1, 128, 256>}, {transform_indices = @transform_2, window_bounds = array<i64: 1, 128, 256>}, {transform_indices = @transform_3, window_bounds = array<i64: 1, 256, 128>}, {transform_indices = @transform_4, window_bounds = array<i64: 8, 128>}]} {
    %c0_i32 = arith.constant 0 : i32
    %0 = arith.cmpi eq, %arg1, %c0_i32 : i32
    %1 = arith.extui %0 : i1 to i32
    %c0_i32_0 = arith.constant 0 : i32
    %2 = arith.cmpi ne, %1, %c0_i32_0 : i32
    scf.if %2 {
      %cst_19 = arith.constant 0.000000e+00 : f32
      %26 = vector.broadcast %cst_19 : f32 to vector<8x128xf32>
      %c0_20 = arith.constant 0 : index
      %c0_21 = arith.constant 0 : index
      %27 = vector.load %arg7[%c0_20, %c0_21] : memref<8x128xf32, #tpu.memory_space<vmem>>, vector<8x128xf32>
      tpu.vector_store %arg7[%c0_20, %c0_21], %26 {strides = array<i32>} : memref<8x128xf32, #tpu.memory_space<vmem>>, vector<8x128xf32>,
    } else {
    }
    %c0 = arith.constant 0 : index
    %c0_1 = arith.constant 0 : index
    %3 = vector.load %arg2[%c0, %c0_1] : memref<8x128xf32, #tpu.memory_space<vmem>>, vector<8x128xf32>
    %c0_2 = arith.constant 0 : index
    %c0_3 = arith.constant 0 : index
    %c0_4 = arith.constant 0 : index
    %4 = vector.load %arg3[%c0_2, %c0_3, %c0_4] : memref<1x128x256xf32, #tpu.memory_space<vmem>>, vector<1x128x256xf32>
    %5 = vector.shape_cast %4 : vector<1x128x256xf32> to vector<128x256xf32>
    %cst = arith.constant dense<0.000000e+00> : vector<8x256xf32>
    %6 = tpu.matmul %3, %5, %cst {dimension_numbers = #tpu.dot_dimension_numbers<[1], [0], [0], [1], [0, 0, 1, 1], [], []>} : vector<8x128xf32>, vector<128x256xf32>, vector<8x256xf32> -> vector<8x256xf32>
    %c0_5 = arith.constant 0 : index
    %c0_6 = arith.constant 0 : index
    %c0_7 = arith.constant 0 : index
    %7 = vector.load %arg4[%c0_5, %c0_6, %c0_7] : memref<1x128x256xf32, #tpu.memory_space<vmem>>, vector<1x128x256xf32>
    %8 = vector.shape_cast %7 : vector<1x128x256xf32> to vector<128x256xf32>
    %cst_8 = arith.constant dense<0.000000e+00> : vector<8x256xf32>
    %9 = tpu.matmul %3, %8, %cst_8 {dimension_numbers = #tpu.dot_dimension_numbers<[1], [0], [0], [1], [0, 0, 1, 1], [], []>} : vector<8x128xf32>, vector<128x256xf32>, vector<8x256xf32> -> vector<8x256xf32>
    %10 = arith.negf %9 : vector<8x256xf32>
    %11 = math.exp %10 : vector<8x256xf32>
    %cst_9 = arith.constant 1.000000e+00 : f32
    %12 = vector.broadcast %cst_9 : f32 to vector<8x256xf32>
    %13 = arith.addf %12, %11 : vector<8x256xf32>
    %14 = arith.divf %12, %13 : vector<8x256xf32>
    %15 = arith.mulf %9, %14 : vector<8x256xf32>
    %16 = arith.mulf %6, %15 : vector<8x256xf32>
    %c0_10 = arith.constant 0 : index
    %c0_11 = arith.constant 0 : index
    %17 = vector.load %arg7[%c0_10, %c0_11] : memref<8x128xf32, #tpu.memory_space<vmem>>, vector<8x128xf32>
    %c0_12 = arith.constant 0 : index
    %c0_13 = arith.constant 0 : index
    %c0_14 = arith.constant 0 : index
    %18 = vector.load %arg5[%c0_12, %c0_13, %c0_14] : memref<1x256x128xf32, #tpu.memory_space<vmem>>, vector<1x256x128xf32>
    %19 = vector.shape_cast %18 : vector<1x256x128xf32> to vector<256x128xf32>
    %cst_15 = arith.constant dense<0.000000e+00> : vector<8x128xf32>
    %20 = tpu.matmul %16, %19, %cst_15 {dimension_numbers = #tpu.dot_dimension_numbers<[1], [0], [0], [1], [0, 0, 1, 1], [], []>} : vector<8x256xf32>, vector<256x128xf32>, vector<8x128xf32> -> vector<8x128xf32>
    %21 = arith.addf %17, %20 : vector<8x128xf32>
    %c0_16 = arith.constant 0 : index
    %c0_17 = arith.constant 0 : index
    %22 = vector.load %arg7[%c0_16, %c0_17] : memref<8x128xf32, #tpu.memory_space<vmem>>, vector<8x128xf32>
    tpu.vector_store %arg7[%c0_16, %c0_17], %21 {strides = array<i32>} : memref<8x128xf32, #tpu.memory_space<vmem>>, vector<8x128xf32>,
    %c1_i32 = arith.constant 1 : i32
    %23 = arith.cmpi eq, %arg1, %c1_i32 : i32
    %24 = arith.extui %23 : i1 to i32
    %c0_i32_18 = arith.constant 0 : i32
    %25 = arith.cmpi ne, %24, %c0_i32_18 : i32
    scf.if %25 {
      %c0_19 = arith.constant 0 : index
      %c0_20 = arith.constant 0 : index
      %26 = vector.load %arg7[%c0_19, %c0_20] : memref<8x128xf32, #tpu.memory_space<vmem>>, vector<8x128xf32>
      %c0_21 = arith.constant 0 : index
      %c0_22 = arith.constant 0 : index
      %27 = vector.load %arg6[%c0_21, %c0_22] : memref<8x128xf32, #tpu.memory_space<vmem>>, vector<8x128xf32>
      tpu.vector_store %arg6[%c0_21, %c0_22], %26 {strides = array<i32>} : memref<8x128xf32, #tpu.memory_space<vmem>>, vector<8x128xf32>,
    } else {
    }
    return
  }
  func.func @transform_0(%arg0: i32, %arg1: i32) -> (i32, i32) {
    %c0_i32 = arith.constant 0 : i32
    %c0_i32_0 = arith.constant 0 : i32
    return %arg0, %c0_i32 : i32, i32
  }
  func.func @transform_1(%arg0: i32, %arg1: i32) -> (i32, i32, i32) {
    %c0_i32 = arith.constant 0 : i32
    %c0_i32_0 = arith.constant 0 : i32
    %c0_i32_1 = arith.constant 0 : i32
    return %arg1, %c0_i32, %c0_i32_0 : i32, i32, i32
  }
  func.func @transform_2(%arg0: i32, %arg1: i32) -> (i32, i32, i32) {
    %c0_i32 = arith.constant 0 : i32
    %c0_i32_0 = arith.constant 0 : i32
    %c0_i32_1 = arith.constant 0 : i32
    return %arg1, %c0_i32, %c0_i32_0 : i32, i32, i32
  }
  func.func @transform_3(%arg0: i32, %arg1: i32) -> (i32, i32, i32) {
    %c0_i32 = arith.constant 0 : i32
    %c0_i32_0 = arith.constant 0 : i32
    %c0_i32_1 = arith.constant 0 : i32
    return %arg1, %c0_i32, %c0_i32_0 : i32, i32, i32
  }
  func.func @transform_4(%arg0: i32, %arg1: i32) -> (i32, i32) {
    %c0_i32 = arith.constant 0 : i32
    %c0_i32_0 = arith.constant 0 : i32
    return %arg0, %c0_i32 : i32, i32
  }
}

</mosaic_0001>

<bundles_post_ra>
// kernel: tpu_custom_call.1
= control target key start
LH: loop header
LB: loop body
LE: loop exit
PB: predicated region body
PF: predicated region fallthrough
CT: control target
= control target key end

     0   :  { %s1927_s0 = inlined_call_operand.hbm [shape: f32[16,128], index: 0, kind: input, shape index: {}]   ;;  %s1928_s1 = inlined_call_operand.hbm [shape: f32[2,128,256], index: 1, kind: input, shape index: {}]   ;;  %s1929_s2 = inlined_call_operand.hbm [shape: f32[2,128,256], index: 2, kind: input, shape index: {}]   ;;  %s1930_s3 = inlined_call_operand.hbm [shape: f32[2,256,128], index: 3, kind: input, shape index: {}]   ;;  %s1931_s4 = inlined_call_operand.hbm [shape: f32[16,128], index: 4, kind: output, shape index: {}]  }
   0x1   :  { %1952 = sst [smem:[#allocation27_spill]] %s1928_s1 }
   0x2   :  { %1953 = sst [smem:[#allocation28_spill]] %s1931_s4 }
   0x3   :  { %9 = vsyncpa [#allocation4], 0 }
   0x4   :  { %11 = vsyncpa [#allocation4 + $0x1], 0 }
   0x5   :  { %12 = vsyncpa [#allocation7], 0 }
   0x6   :  { %14 = vsyncpa [#allocation7 + $0x1], 0 }
   0x7   :  { %15 = vsyncpa [#allocation10], 0 }
   0x8   :  { %17 = vsyncpa [#allocation10 + $0x1], 0 }
   0x9   :  { %18 = vsyncpa [#allocation5], 0 }
   0xa   :  { %20 = vsyncpa [#allocation5 + $0x1], 0  ;;  %s1424_s15 = smov 0   ;;  %s1426_s16 = smov 0  }
   0xb   :  { %s1428_s17 = smov 0   ;;  %s1430_s18 = smov 0  }
   0xc   :  { %s1432_s19 = smov 0   ;;  %s1434_s20 = smov 0  }
   0xd   :  { %s1436_s21 = smov 0   ;;  %s1438_s22 = smov 0  }
   0xe   :  { %s1440_s23 = smov 0   ;;  %s1442_s24 = smov 0  }
   0xf   :  { %s1444_s25 = smov 0  }
  0x10 LB: > { %1954 = sst [smem:[#allocation16_spill]] %s1366_s20  ;;  %s35_s26 = sadd.s32 1, %s1378_s23  ;;  %s1386_s25 = sphi %s1444_s25, %s26_s25   ;;  %s1382_s24 = sphi %s1442_s24, %s2001_s24   ;;  %s1378_s23 = sphi %s1440_s23, %s2000_s23   ;;  %s1374_s22 = sphi %s1438_s22, %s1999_s22   ;;  %s1370_s21 = sphi %s1436_s21, %s1998_s21   ;;  %s1366_s20 = sphi %s1434_s20, %s1997_s20   ;;  %s1362_s19 = sphi %s1432_s19, %s2006_s19   ;;  %s1358_s18 = sphi %s1430_s18, %s2005_s18   ;;  %s1354_s17 = sphi %s1428_s17, %s2004_s17   ;;  %s1350_s16 = sphi %s1426_s16, %s2003_s16   ;;  %s1346_s15 = sphi %s1424_s15, %s2002_s15  }
  0x11   : > { %1955 = sst [smem:[#allocation17_spill]] %s1370_s21  ;;  %p1936_p0 = scmp.eq.s32.totalorder %s1386_s25, 0 }
  0x12   : > { %1956 = sst [smem:[#allocation18_spill]] %s1374_s22  ;;  %p1481_p1 = scmp.ge.s32.totalorder %s35_s26, 2 }
  0x13   : > { %1957 = sst [smem:[#allocation19_spill]] %s1378_s23  ;;  %s71_s28 = sadd.s32 1, %s1354_s17 }
  0x14   : > { %1958 = sst [smem:[#allocation20_spill]] %s1382_s24  ;;  %p78_p2 = scmp.ne.s32.totalorder %s1354_s17, %s1350_s16 }
  0x15   : > { %s1959_s27 = scalar_select %p1481_p1, 1, 0 }
  0x16   : > { %s2008_s26 = smov (%p1481_p1, %s35_s26), 0  ;;  %p80_p3 = por %p78_p2, %p1936_p0 }
  0x17   : > { %1960 = sst [smem:[#allocation21_spill]] %s2008_s26  ;;  %p1935_p4 = scmp.lt.s32.totalorder %s1386_s25, 4 }
  0x18   : > { %s68_s29 = ssub.s32 %s1378_s23, %s2008_s26  ;;  %s204_s30 = sand.u32 1, %s1386_s25  }
  0x19   : > { %p69_p5 = scmp.eq.s32.totalorder %s68_s29, 0  ;;  %s1932_s5 = sand.u32 1, %s1354_s17  }
  0x1a   : > { %s1500_s6 = sshll.u32 %s1378_s23, 12  ;;  %s1507_s8 = sshll.u32 %s1932_s5, 8 }
  0x1b   : > { %s1503_s7 = scalar_select %p69_p5, %s1354_s17, %s71_s28  }
  0x1c   : > { %s1962_s1 = sld [smem:[#allocation27_spill]]  ;;  %p1517_p6 = pnand %p1935_p4, %p80_p3 }
  0x1d   : > { %1961 = sst [smem:[#allocation22_spill]] %s1503_s7  ;;  %s208_s13 = scalar_lea.vmem [#allocation6], %s1507_s8 }
  0x1e   : > { %s1963_s12 = scalar_select %p1517_p6, 1, 0 }
  0x1f   : > { %s215_s14 = sshll.u32 %s208_s13, 4  ;;  %s1525_s28 = scalar_lea.sflag [#allocation7], %s204_s30  ;;  %s1522_s14 = int_to_ptr.vmem [resolvable:$true] %s215_s14 }
  0x20   : > { %p1531_p9 = pneg %p1517_p6 }
  0x22   : > { %s1513_s11 = scalar_lea.hbm %s1962_s1, %s1500_s6  ;;  %s1141_s13 = scalar_lea.hbm %s1962_s1, 8192 }
  0x23   : > { %s1136_s29 = scalar_lea.hbm %s1513_s11, 4096  ;;  %p1142_p12 = scmp.lt.u32.totalorder %s1513_s11, %s1962_s1 }
  0x24   : > { %p1137_p8 = scmp.ne.s32.totalorder %s1513_s11, %s1136_s29  ;;  %p1143_p13 = scmp.lt.u32.totalorder %s1141_s13, %s1136_s29 }
  0x25   : > { %p1145_p3 = scmp.lt.u32.totalorder %s1136_s29, %s1513_s11 }
  0x26   : > { %p1139_p10 = pnand %p1531_p9, %p1137_p8  ;;  %p1144_p2 = por %p1143_p13, %p1142_p12 }
  0x28   : > { %p1140_p11 = pneg %p1139_p10  ;;  %p1146_p5 = por %p1145_p3, %p1144_p2 }
  0x2a   : > { %p1147_p4 = pnand %p1146_p5, %p1140_p11 }
  0x2c   : > { %1150 = shalt.err (!%p1147_p4)
}
  0x2d   : > { %s1151_s30 = scalar_lea.vmem %s1522_s14, 4096  ;;  %s1388_s5 = smov [#allocation6]  }
  0x2e   : > { %p1152_p8 = scmp.ne.s32.totalorder %s1522_s14, %s1151_s30  ;;  %s1156_s10 = sshll.u32 %s1388_s5, 4  ;;  %s1157_s10 = int_to_ptr.vmem [resolvable:$false] %s1156_s10 }
  0x2f   : > { %s1158_s23 = scalar_lea.vmem %s1157_s10, 8192  ;;  %p1159_p7 = scmp.lt.s32.totalorder %s1522_s14, %s1157_s10 }
  0x30   : > { %p1154_p10 = pnand %p1152_p8, %p1531_p9  ;;  %p1160_p1 = scmp.lt.s32.totalorder %s1158_s23, %s1151_s30 }
  0x32   : > { %p1155_p0 = pneg %p1154_p10  ;;  %p1161_p12 = por %p1160_p1, %p1159_p7 }
  0x34   : > { %p1162_p13 = pnand %p1161_p12, %p1155_p0 }
  0x36   : > { %1165 = shalt.err (!%p1162_p13)
}
  0x37   : > { %s1938_s26 = smov 256   ;;  %s1939_s29 = smov 16  }
  0x38   : > { %1021 = dma.hbm_to_vmem [thread:$0]  (!%p1517_p6), %s1513_s11, 4096, %s1522_s14, %s1525_s28, %s1938_s26, %s1938_s26, %s1939_s29  }
  0x39   : > { %p265_p0 = scmp.lt.s32.totalorder %s1386_s25, 5  ;;  %p1965_p1 = scmp.ge.s32.totalorder %s1386_s25, 1 }
  0x3a   : > { %s1566_s30 = sadd.s32 4294967295, %s1386_s25   ;;  %s843_s5 = sadd.s32 4294967294, %s1386_s25  }
  0x3b   : > { %p1561_p4 = pnand %p1965_p1, %p265_p0  ;;  %s38_s10 = sadd.s32 1, %s1382_s24 }
  0x3c   : > { %s45_s23 = sadd.s32 1, %s1366_s20  ;;  %p1967_p7 = scmp.ne.s32.totalorder %s1959_s27, 0 }
  0x3d   : > { %s1966_s13 = scalar_select %p1561_p4, 1, 0 }
  0x3e   : > { %s2010_s10 = smov (!%p1967_p7, %s38_s10), %s1382_s24  ;;  %p52_p11 = scmp.ne.s32.totalorder %s1366_s20, %s1362_s19 }
  0x3f   : > { %p58_p2 = scmp.ne.s32.totalorder %s1362_s19, %s1358_s18  ;;  %p40_p3 = scmp.ge.s32.totalorder %s2010_s10, 2 }
  0x40   : > { %p59_p5 = scmp.eq.s32.totalorder %s1566_s30, 0  ;;  %p1968_p8 = scmp.eq.s32.totalorder %s1386_s25, 0 }
  0x41   : > { %p84_p12 = scmp.ne.s32.totalorder %s1350_s16, %s1346_s15  ;;  %s2012_s10 = smov (%p40_p3, %s2010_s10), 0 }
  0x42   : > { %p1584_p10 = por %p1968_p8, %p52_p11  ;;  %1970 = sst [smem:[#allocation23_spill]] %s2012_s10 }
  0x43   : > { %p1595_p13 = por %p59_p5, %p58_p2  ;;  %p1599_p0 = por %p84_p12, %p59_p5 }
  0x44   : > { %s42_s26 = ssub.s32 %s1382_s24, %s2012_s10  ;;  %p160_p1 = scmp.eq.s32.totalorder %s1566_s30, 3 }
  0x45   : > { %s1971_s27 = scalar_select %p1595_p13, 1, 0 }
  0x46   : > { %s1972_s14 = scalar_select %p1599_p0, 1, 0 }
  0x47   : > { %p43_p7 = scmp.eq.s32.totalorder %s42_s26, 0  ;;  %p166_p8 = scmp.eq.s32.totalorder %s843_s5, 3 }
  0x48   : > { %p1609_p3 = por %p160_p1, %p52_p11  ;;  %s186_s29 = sand.u32 1, %s1366_s20  }
  0x49   : > { %s1615_s1 = scalar_select %p43_p7, %s1366_s20, %s45_s23  }
  0x4a   : > { %s1973_s15 = scalar_select %p1609_p3, 1, 0 }
  0x4b   : > { %1975 = sst [smem:[#allocation25_spill]] %s1615_s1  ;;  %p1620_p4 = por %p166_p8, %p58_p2 }
  0x4c   : > { %1974 = sst [smem:[#allocation24_spill]] %s1973_s15  ;;  %s846_s4 = sshll.u32 %s186_s29, 3 }
  0x4d   : > { %s1976_s7 = scalar_select %p1620_p4, 1, 0 }
  0x4e   : > { %s847_s22 = sshll.u32 %s1382_s24, 7  ;;  %s190_s5 = scalar_lea.vmem [#allocation3], %s846_s4 }
  0x4f   : > { %1977 = sst [smem:[#allocation26_spill]] %s1976_s7  ;;  %s1628_s26 = scalar_lea.hbm %s1927_s0, %s847_s22 }
  0x50   : > { %s197_s15 = sshll.u32 %s190_s5, 4  ;;  %p1978_p11 = scmp.lt.s32.totalorder %s1386_s25, 4  ;;  %s1638_s15 = int_to_ptr.vmem [resolvable:$true] %s197_s15 }
  0x51   : > { %s1644_s22 = scalar_lea.hbm %s1929_s2, %s1500_s6  ;;  %s187_s10 = scalar_lea.sflag [#allocation4], %s186_s29 }
  0x52   : > { %p1634_p5 = pnand %p1978_p11, %p1584_p10  ;;  %s1166_s1 = scalar_lea.hbm %s1628_s26, 128 }
  0x53   : > { %p1167_p2 = scmp.ne.s32.totalorder %s1628_s26, %s1166_s1  ;;  %s1171_s5 = scalar_lea.hbm %s1927_s0, 256 }
  0x54   : > { %p1168_p12 = pneg %p1634_p5  ;;  %p1172_p7 = scmp.lt.u32.totalorder %s1628_s26, %s1927_s0 }
  0x55   : > { %p1173_p8 = scmp.lt.u32.totalorder %s1171_s5, %s1166_s1  ;;  %p1175_p4 = scmp.lt.u32.totalorder %s1166_s1, %s1628_s26 }
  0x56   : > { %p1169_p10 = pnand %p1168_p12, %p1167_p2 }
  0x57   : > { %p1174_p11 = por %p1173_p8, %p1172_p7 }
  0x58   : > { %p1170_p1 = pneg %p1169_p10 }
  0x59   : > { %p1176_p3 = por %p1175_p4, %p1174_p11 }
  0x5b   : > { %p1177_p0 = pnand %p1176_p3, %p1170_p1 }
  0x5d   : > { %1180 = shalt.err (!%p1177_p0)
}
  0x5e   : > { %s1181_s24 = scalar_lea.vmem %s1638_s15, 128  ;;  %s1391_s29 = smov [#allocation3]  }
  0x5f   : > { %p1182_p2 = scmp.ne.s32.totalorder %s1638_s15, %s1181_s24  ;;  %s1186_s21 = sshll.u32 %s1391_s29, 4  ;;  %s1187_s21 = int_to_ptr.vmem [resolvable:$false] %s1186_s21 }
  0x60   : > { %s1188_s20 = scalar_lea.vmem %s1187_s21, 256  ;;  %p1189_p6 = scmp.lt.s32.totalorder %s1638_s15, %s1187_s21 }
  0x61   : > { %p1184_p10 = pnand %p1182_p2, %p1168_p12  ;;  %p1190_p7 = scmp.lt.s32.totalorder %s1188_s20, %s1181_s24 }
  0x63   : > { %p1185_p13 = pneg %p1184_p10  ;;  %p1191_p8 = por %p1190_p7, %p1189_p6 }
  0x65   : > { %p1192_p4 = pnand %p1191_p8, %p1185_p13 }
  0x67   : > { %1195 = shalt.err (!%p1192_p4)
}
  0x68   : > { %1018 = dma.hbm_to_vmem [thread:$0]  (!%p1634_p5), %s1628_s26, 128, %s1638_s15, %s187_s10  }
  0x69   : > { %s229_s1 = scalar_lea.vmem [#allocation8], %s1507_s8  ;;  %s1196_s4 = scalar_lea.hbm %s1644_s22, 4096 }
  0x6a   : > { %s236_s7 = sshll.u32 %s229_s1, 4  ;;  %p1197_p0 = scmp.ne.s32.totalorder %s1644_s22, %s1196_s4  ;;  %s1672_s7 = int_to_ptr.vmem [resolvable:$true] %s236_s7 }
  0x6b   : > { %s1201_s5 = scalar_lea.hbm %s1929_s2, 8192  ;;  %p1202_p3 = scmp.lt.u32.totalorder %s1644_s22, %s1929_s2 }
  0x6c   : > { %p1199_p6 = pnand %p1197_p0, %p1531_p9  ;;  %p1203_p12 = scmp.lt.u32.totalorder %s1201_s5, %s1196_s4 }
  0x6d   : > { %p1205_p5 = scmp.lt.u32.totalorder %s1196_s4, %s1644_s22 }
  0x6e   : > { %p1200_p13 = pneg %p1199_p6  ;;  %p1204_p1 = por %p1203_p12, %p1202_p3 }
  0x70   : > { %p1206_p11 = por %p1205_p5, %p1204_p1 }
  0x72   : > { %p1207_p2 = pnand %p1206_p11, %p1200_p13 }
  0x74   : > { %1210 = shalt.err (!%p1207_p2)
}
  0x75   : > { %s1211_s15 = scalar_lea.vmem %s1672_s7, 4096  ;;  %s1392_s26 = smov [#allocation8]  }
  0x76   : > { %p1212_p10 = scmp.ne.s32.totalorder %s1672_s7, %s1211_s15  ;;  %s1216_s10 = sshll.u32 %s1392_s26, 4  ;;  %s1217_s10 = int_to_ptr.vmem [resolvable:$false] %s1216_s10 }
  0x77   : > { %s1218_s21 = scalar_lea.vmem %s1217_s10, 8192  ;;  %p1219_p4 = scmp.lt.s32.totalorder %s1672_s7, %s1217_s10 }
  0x78   : > { %p1214_p7 = pnand %p1212_p10, %p1531_p9  ;;  %p1220_p0 = scmp.lt.s32.totalorder %s1218_s21, %s1211_s15 }
  0x7a   : > { %p1215_p8 = pneg %p1214_p7  ;;  %p1221_p6 = por %p1220_p0, %p1219_p4 }
  0x7c   : > { %p1222_p3 = pnand %p1221_p6, %p1215_p8 }
  0x7e   : > { %1225 = shalt.err (!%p1222_p3)
}
  0x7f   : > { %p1980_p13 = scmp.ne.s32.totalorder %s1963_s12, 0  ;;  %s1981_s20 = smov 16  }
  0x80   : > { %s1982_s1 = smov 256   ;;  %s1703_s23 = scalar_lea.hbm %s1930_s3, %s1500_s6 }
  0x81   : > { %1024 = dma.hbm_to_vmem [thread:$0]  (!%p1980_p13), %s1644_s22, 4096, %s1672_s7, %s1525_s28, %s1982_s1, %s1982_s1, %s1981_s20  }
  0x82   : > { %s250_s5 = scalar_lea.vmem [#allocation9], %s1507_s8  ;;  %s1983_s29 = sand.u32 1, %s1354_s17  }
  0x83   : > { %s257_s24 = sshll.u32 %s250_s5, 4  ;;  %s1710_s15 = scalar_lea.sflag [#allocation10], %s1983_s29  ;;  %s1706_s24 = int_to_ptr.vmem [resolvable:$true] %s257_s24 }
  0x84   : > { %s1226_s26 = scalar_lea.hbm %s1703_s23, 4096  ;;  %s1231_s6 = scalar_lea.hbm %s1930_s3, 8192 }
  0x85   : > { %p1227_p12 = scmp.ne.s32.totalorder %s1703_s23, %s1226_s26  ;;  %p1232_p11 = scmp.lt.u32.totalorder %s1703_s23, %s1930_s3 }
  0x86   : > { %p1233_p2 = scmp.lt.u32.totalorder %s1231_s6, %s1226_s26  ;;  %p1235_p7 = scmp.lt.u32.totalorder %s1226_s26, %s1703_s23 }
  0x87   : > { %p1229_p1 = pnand %p1227_p12, %p1531_p9 }
  0x88   : > { %p1234_p10 = por %p1233_p2, %p1232_p11 }
  0x89   : > { %p1230_p5 = pneg %p1229_p1 }
  0x8a   : > { %p1236_p8 = por %p1235_p7, %p1234_p10 }
  0x8c   : > { %p1237_p4 = pnand %p1236_p8, %p1230_p5 }
  0x8e   : > { %1240 = shalt.err (!%p1237_p4)
}
  0x8f   : > { %s1241_s8 = scalar_lea.vmem %s1706_s24, 4096  ;;  %s1393_s21 = smov [#allocation9]  }
  0x90   : > { %p1242_p0 = scmp.ne.s32.totalorder %s1706_s24, %s1241_s8  ;;  %s1246_s20 = sshll.u32 %s1393_s21, 4  ;;  %s1247_s20 = int_to_ptr.vmem [resolvable:$false] %s1246_s20 }
  0x91   : > { %s1248_s1 = scalar_lea.vmem %s1247_s20, 8192  ;;  %p1249_p12 = scmp.lt.s32.totalorder %s1706_s24, %s1247_s20 }
  0x92   : > { %p1244_p6 = pnand %p1242_p0, %p1531_p9  ;;  %p1250_p1 = scmp.lt.s32.totalorder %s1248_s1, %s1241_s8 }
  0x94   : > { %p1245_p3 = pneg %p1244_p6  ;;  %p1251_p11 = por %p1250_p1, %p1249_p12 }
  0x96   : > { %p1252_p2 = pnand %p1251_p11, %p1245_p3 }
  0x98   : > { %1255 = shalt.err (!%p1252_p2)
}
  0x99   : > { %s1394_s4 = smov 128   ;;  %s1395_s11 = smov 8  }
  0x9a   : > { %1027 = dma.hbm_to_vmem [thread:$0]  (!%p1980_p13), %s1703_s23, 4096, %s1706_s24, %s1710_s15, %s1394_s4, %s1394_s4, %s1395_s11  }
  0x9b   : > { %p1984_p9 = scmp.ne.s32.totalorder %s1966_s13, 0 }
  0x9c   : > { %s1737_s9 = sand.u32 (!%p1984_p9), 1, %s1362_s19   ;;  %p1985_p5 = scmp.ne.s32.totalorder (!%p1984_p9), %s1971_s27, 0 }
  0x9d   : > { %269 = sbr.rel (%p1984_p9) target bundleno = 720 (0x2d0), region = 36  ;;  %s858_s5 = sshll.u32 (!%p1984_p9), %s1737_s9, 3 }
  0x9e   : > { %s272_s29 = scalar_lea.sflag (!%p1984_p9), [#allocation4], %s1737_s9  ;;  %s1741_s26 = scalar_lea.vmem (!%p1984_p9), [#allocation3], %s858_s5 }
  0xa4   : > { %1329 = dma.done.wait (%p1985_p5), %s272_s29, 128  }
  0xa5   : > { %1331 = vsyncadd (%p1985_p5), %s272_s29, 4294967168  ;;  %s280_s12 = sand.u32 1, %s1566_s30   ;;  %s282_s13 = sand.u32 1, %s1350_s16  }
  0xa6   : > { %s859_s23 = sshll.u32 %s282_s13, 8  ;;  %s281_s24 = scalar_lea.sflag [#allocation7], %s280_s12 }
  0xa7   : > { %s1749_s15 = scalar_lea.vmem [#allocation6], %s859_s23  ;;  %p1986_p13 = scmp.ne.s32.totalorder %s1972_s14, 0 }
  0xa9   : > { %1333 = dma.done.wait (%p1986_p13), %s281_s24, 8192  }
  0xaa   : > { %1335 = vsyncadd (%p1986_p13), %s281_s24, 4294959104  ;;  %s1755_s28 = scalar_lea.vmem [#allocation8], %s859_s23  ;;  %s299_s22 = scalar_lea.sflag [#allocation10], %s282_s13 }
  0xab   : > { %s1757_s27 = scalar_lea.vmem [#allocation9], %s859_s23 }
  0xac   : > { %1337 = dma.done.wait (%p1986_p13), %s299_s22, 4096  }
  0xad   : > { %1339 = vsyncadd (%p1986_p13), %s299_s22, 4294963200  ;;  %s1763_s30 = scalar_lea.vmem [#allocation11], %s858_s5  ;;  %s1987_s6 = sld [smem:[#allocation17_spill]] }
  0xb3   : > { %p863_p10 = scmp.ne.s32.totalorder %s1987_s6, 0 }
  0xb4   : > { %v1396_v0 = vmov (!%p863_p10), 0.0  }
  0xb5   : > { %345 = sbr.rel (%p863_p10) target bundleno = 188 (0xbc), region = 56  ;;  %346 = vst [vmem:[#allocation2] sm:$0xff] (!%p863_p10), %v1396_v0 }
  0xbc PF: > { %v452_v1 = vld [vmem:[%s1755_s28 + $0x8] sm:$0xff]  ;;  %v454_v2 = vld [vmem:[%s1755_s28 + $0x18] sm:$0xff]  ;;  %v451_v3 = vld [vmem:[%s1755_s28] sm:$0xff]  ;;  %v1397_v8 = vmov 0.0   ;;  %s1988_s14 = sld [smem:[#allocation17_spill]] }
  0xbd   : > { %v941_v4 = vpack.c.bf16 %v454_v2, %v452_v1  ;;  %v453_v5 = vld [vmem:[%s1755_s28 + $0x10] sm:$0xff]  ;;  %v456_v6 = vld [vmem:[%s1755_s28 + $0x28] sm:$0xff]  ;;  %v458_v7 = vld [vmem:[%s1755_s28 + $0x38] sm:$0xff]  ;;  %547 = vmatprep.mubr.f32.mxu1 %v1397_v8  ;;  %444 = vmatprep.mubr.f32.mxu0 %v1397_v8 }
  0xbe   : > { %v943_v9 = vpack.c.bf16 %v453_v5, %v451_v3  ;;  %v945_v10 = vpack.c.bf16 %v458_v7, %v456_v6  ;;  %v455_v11 = vld [vmem:[%s1755_s28 + $0x20] sm:$0xff]  ;;  %v457_v12 = vld [vmem:[%s1755_s28 + $0x30] sm:$0xff]  ;;  %v460_v13 = vld [vmem:[%s1755_s28 + $0x48] sm:$0xff] }
  0xbf   : > { %942 = vmatprep.subr.bf16.mxu1 %v941_v4  ;;  %v462_v14 = vld [vmem:[%s1755_s28 + $0x58] sm:$0xff]  ;;  %v947_v15 = vpack.c.bf16 %v457_v12, %v455_v11  ;;  %v459_v17 = vld [vmem:[%s1755_s28 + $0x40] sm:$0xff]  ;;  %v461_v18 = vld [vmem:[%s1755_s28 + $0x50] sm:$0xff] }
  0xc0   : > { %944 = vmatpush1.bf16.msra.mxu1 %v943_v9  ;;  %v949_v16 = vpack.c.bf16 %v462_v14, %v460_v13  ;;  %v464_v19 = vld [vmem:[%s1755_s28 + $0x68] sm:$0xff]  ;;  %v466_v20 = vld [vmem:[%s1755_s28 + $0x78] sm:$0xff]  ;;  %v951_v21 = vpack.c.bf16 %v461_v18, %v459_v17  ;;  %v463_v22 = vld [vmem:[%s1755_s28 + $0x60] sm:$0xff] }
  0xc1   : > { %946 = vmatprep.subr.bf16.mxu1 %v945_v10  ;;  %v465_v23 = vld [vmem:[%s1755_s28 + $0x70] sm:$0xff]  ;;  %v953_v24 = vpack.c.bf16 %v466_v20, %v464_v19  ;;  %v468_v25 = vld [vmem:[%s1755_s28 + $0x88] sm:$0xff]  ;;  %v351_v27 = vld [vmem:[%s1749_s15 + $0x18] sm:$0xff] }
  0xc2   : > { %v349_v26 = vld [vmem:[%s1749_s15 + $0x8] sm:$0xff]  ;;  %v470_v28 = vld [vmem:[%s1755_s28 + $0x98] sm:$0xff]  ;;  %v348_v30 = vld [vmem:[%s1749_s15] sm:$0xff]  ;;  %v955_v35 = vpack.c.bf16 %v465_v23, %v463_v22  ;;  %p866_p7 = scmp.ne.s32.totalorder %s1988_s14, 1 }
  0xc3   : > { %v909_v29 = vpack.c.bf16 %v351_v27, %v349_v26  ;;  %v350_v31 = vld [vmem:[%s1749_s15 + $0x10] sm:$0xff]  ;;  %v467_v32 = vld [vmem:[%s1755_s28 + $0x80] sm:$0xff]  ;;  %v472_v36 = vld [vmem:[%s1755_s28 + $0xa8] sm:$0xff]  ;;  %v957_v40 = vpack.c.bf16 %v470_v28, %v468_v25 }
  0xc4   : > { %948 = vmatpush1.bf16.msra.mxu1 %v947_v15  ;;  %v469_v33 = vld [vmem:[%s1755_s28 + $0x90] sm:$0xff]  ;;  %v911_v34 = vpack.c.bf16 %v350_v31, %v348_v30  ;;  %v353_v37 = vld [vmem:[%s1749_s15 + $0x28] sm:$0xff]  ;;  %v355_v38 = vld [vmem:[%s1749_s15 + $0x38] sm:$0xff] }
  0xc5   : > { %950 = vmatprep.subr.bf16.mxu1 %v949_v16  ;;  %910 = vmatprep.subr.bf16.mxu0 %v909_v29  ;;  %v352_v39 = vld [vmem:[%s1749_s15 + $0x20] sm:$0xff]  ;;  %v474_v41 = vld [vmem:[%s1755_s28 + $0xb8] sm:$0xff]  ;;  %v913_v42 = vpack.c.bf16 %v355_v38, %v353_v37  ;;  %v354_v43 = vld [vmem:[%s1749_s15 + $0x30] sm:$0xff]  ;;  %v959_v52 = vpack.c.bf16 %v469_v33, %v467_v32 }
  0xc6   : > { %912 = vmatpush1.bf16.msra.mxu0 %v911_v34  ;;  %v357_v44 = vld [vmem:[%s1749_s15 + $0x48] sm:$0xff]  ;;  %v915_v45 = vpack.c.bf16 %v354_v43, %v352_v39  ;;  %v359_v46 = vld [vmem:[%s1749_s15 + $0x58] sm:$0xff]  ;;  %v356_v47 = vld [vmem:[%s1749_s15 + $0x40] sm:$0xff]  ;;  %v961_v53 = vpack.c.bf16 %v474_v41, %v472_v36 }
  0xc7   : > { %v358_v48 = vld [vmem:[%s1749_s15 + $0x50] sm:$0xff]  ;;  %914 = vmatprep.subr.bf16.mxu0 %v913_v42  ;;  %v917_v49 = vpack.c.bf16 %v359_v46, %v357_v44  ;;  %v361_v50 = vld [vmem:[%s1749_s15 + $0x68] sm:$0xff]  ;;  %v363_v51 = vld [vmem:[%s1749_s15 + $0x78] sm:$0xff] }
  0xc8   : > { %952 = vmatpush1.bf16.msra.mxu1 %v951_v21  ;;  %v471_v54 = vld [vmem:[%s1755_s28 + $0xa0] sm:$0xff]  ;;  %v473_v55 = vld [vmem:[%s1755_s28 + $0xb0] sm:$0xff]  ;;  %v476_v56 = vld [vmem:[%s1755_s28 + $0xc8] sm:$0xff]  ;;  %v919_v57 = vpack.c.bf16 %v358_v48, %v356_v47  ;;  %v921_v59 = vpack.c.bf16 %v363_v51, %v361_v50 }
  0xc9   : > { %954 = vmatprep.subr.bf16.mxu1 %v953_v24  ;;  %v478_v58 = vld [vmem:[%s1755_s28 + $0xd8] sm:$0xff]  ;;  %v360_v60 = vld [vmem:[%s1749_s15 + $0x60] sm:$0xff]  ;;  %v362_v61 = vld [vmem:[%s1749_s15 + $0x70] sm:$0xff]  ;;  %v963_v0 = vpack.c.bf16 %v473_v55, %v471_v54 }
  0xca   : > { %916 = vmatpush1.bf16.msra.mxu0 %v915_v45  ;;  %v365_v62 = vld [vmem:[%s1749_s15 + $0x88] sm:$0xff]  ;;  %v367_v63 = vld [vmem:[%s1749_s15 + $0x98] sm:$0xff]  ;;  %v965_v1 = vpack.c.bf16 %v478_v58, %v476_v56  ;;  %v475_v2 = vld [vmem:[%s1755_s28 + $0xc0] sm:$0xff]  ;;  %v923_v5 = vpack.c.bf16 %v362_v61, %v360_v60 }
  0xcb   : > { %918 = vmatprep.subr.bf16.mxu0 %v917_v49  ;;  %v477_v3 = vld [vmem:[%s1755_s28 + $0xd0] sm:$0xff]  ;;  %v480_v4 = vld [vmem:[%s1755_s28 + $0xe8] sm:$0xff]  ;;  %v482_v6 = vld [vmem:[%s1755_s28 + $0xf8] sm:$0xff]  ;;  %v925_v7 = vpack.c.bf16 %v367_v63, %v365_v62 }
  0xcc   : > { %956 = vmatpush1.bf16.msra.mxu1 %v955_v35  ;;  %v364_v8 = vld [vmem:[%s1749_s15 + $0x80] sm:$0xff]  ;;  %v366_v9 = vld [vmem:[%s1749_s15 + $0x90] sm:$0xff]  ;;  %v369_v10 = vld [vmem:[%s1749_s15 + $0xa8] sm:$0xff]  ;;  %v967_v12 = vpack.c.bf16 %v477_v3, %v475_v2  ;;  %v969_v13 = vpack.c.bf16 %v482_v6, %v480_v4 }
  0xcd   : > { %958 = vmatprep.subr.bf16.mxu1 %v957_v40  ;;  %v371_v11 = vld [vmem:[%s1749_s15 + $0xb8] sm:$0xff]  ;;  %v479_v14 = vld [vmem:[%s1755_s28 + $0xe0] sm:$0xff]  ;;  %v481_v15 = vld [vmem:[%s1755_s28 + $0xf0] sm:$0xff]  ;;  %v927_v16 = vpack.c.bf16 %v366_v9, %v364_v8 }
  0xce   : > { %920 = vmatpush1.bf16.msra.mxu0 %v919_v57  ;;  %v929_v17 = vpack.c.bf16 %v371_v11, %v369_v10  ;;  %v368_v18 = vld [vmem:[%s1749_s15 + $0xa0] sm:$0xff]  ;;  %v370_v19 = vld [vmem:[%s1749_s15 + $0xb0] sm:$0xff]  ;;  %v373_v20 = vld [vmem:[%s1749_s15 + $0xc8] sm:$0xff]  ;;  %v971_v22 = vpack.c.bf16 %v481_v15, %v479_v14 }
  0xcf   : > { %922 = vmatprep.subr.bf16.mxu0 %v921_v59  ;;  %v375_v21 = vld [vmem:[%s1749_s15 + $0xd8] sm:$0xff]  ;;  %v931_v23 = vpack.c.bf16 %v370_v19, %v368_v18  ;;  %v372_v25 = vld [vmem:[%s1749_s15 + $0xc0] sm:$0xff]  ;;  %v374_v26 = vld [vmem:[%s1749_s15 + $0xd0] sm:$0xff] }
  0xd0   : > { %960 = vmatpush1.bf16.msra.mxu1 %v959_v52  ;;  %v933_v24 = vpack.c.bf16 %v375_v21, %v373_v20  ;;  %v377_v27 = vld [vmem:[%s1749_s15 + $0xe8] sm:$0xff]  ;;  %v379_v28 = vld [vmem:[%s1749_s15 + $0xf8] sm:$0xff]  ;;  %v935_v30 = vpack.c.bf16 %v374_v26, %v372_v25  ;;  %v376_v32 = vld [vmem:[%s1749_s15 + $0xe0] sm:$0xff] }
  0xd1   : > { %962 = vmatprep.subr.bf16.mxu1 %v961_v53  ;;  %v347_v29 = vld [vmem:[%s1741_s26] sm:$0xff]  ;;  %v937_v31 = vpack.c.bf16 %v379_v28, %v377_v27  ;;  %v587_v35 = vld [vmem:[%s1757_s27 + $0x80] sm:$0xff]  ;;  %v588_v36 = vld [vmem:[%s1757_s27 + $0x88] sm:$0xff] }
  0xd2   : > { %924 = vmatpush1.bf16.msra.mxu0 %v923_v5  ;;  %v378_v33 = vld [vmem:[%s1749_s15 + $0xf0] sm:$0xff]  ;;  %v973_v37 = vpack.c.bf16 %v588_v36, %v587_v35  ;;  %v571_v38 = vld [vmem:[%s1757_s27] sm:$0xff]  ;;  %v572_v39 = vld [vmem:[%s1757_s27 + $0x8] sm:$0xff] }
  0xd3   : > { %926 = vmatprep.subr.bf16.mxu0 %v925_v7  ;;  %v939_v34 = vpack.c.bf16 %v378_v33, %v376_v32  ;;  %v975_v40 = vpack.c.bf16 %v572_v39, %v571_v38  ;;  %v589_v41 = vld [vmem:[%s1757_s27 + $0x90] sm:$0xff]  ;;  %v590_v42 = vld [vmem:[%s1757_s27 + $0x98] sm:$0xff]  ;;  %v591_v47 = vld [vmem:[%s1757_s27 + $0xa0] sm:$0xff] }
  0xd4   : > { %964 = vmatpush1.bf16.msra.mxu1 %v963_v0  ;;  %v977_v43 = vpack.c.bf16 %v590_v42, %v589_v41  ;;  %v573_v44 = vld [vmem:[%s1757_s27 + $0x10] sm:$0xff]  ;;  %v574_v45 = vld [vmem:[%s1757_s27 + $0x18] sm:$0xff]  ;;  %v592_v48 = vld [vmem:[%s1757_s27 + $0xa8] sm:$0xff] }
  0xd5   : > { %966 = vmatprep.subr.bf16.mxu1 %v965_v1  ;;  %v979_v46 = vpack.c.bf16 %v574_v45, %v573_v44  ;;  %v981_v49 = vpack.c.bf16 %v592_v48, %v591_v47  ;;  %v575_v50 = vld [vmem:[%s1757_s27 + $0x20] sm:$0xff]  ;;  %v576_v51 = vld [vmem:[%s1757_s27 + $0x28] sm:$0xff]  ;;  %v593_v53 = vld [vmem:[%s1757_s27 + $0xb0] sm:$0xff] }
  0xd6   : > { %928 = vmatpush1.bf16.msra.mxu0 %v927_v16  ;;  %v983_v52 = vpack.c.bf16 %v576_v51, %v575_v50  ;;  %v594_v54 = vld [vmem:[%s1757_s27 + $0xb8] sm:$0xff]  ;;  %v577_v56 = vld [vmem:[%s1757_s27 + $0x30] sm:$0xff]  ;;  %v595_v59 = vld [vmem:[%s1757_s27 + $0xc0] sm:$0xff] }
  0xd7   : > { %930 = vmatprep.subr.bf16.mxu0 %v929_v17  ;;  %v985_v55 = vpack.c.bf16 %v594_v54, %v593_v53  ;;  %v578_v57 = vld [vmem:[%s1757_s27 + $0x38] sm:$0xff]  ;;  %v596_v60 = vld [vmem:[%s1757_s27 + $0xc8] sm:$0xff]  ;;  %v579_v62 = vld [vmem:[%s1757_s27 + $0x40] sm:$0xff] }
  0xd8   : > { %968 = vmatpush1.bf16.msra.mxu1 %v967_v12  ;;  %v987_v58 = vpack.c.bf16 %v578_v57, %v577_v56  ;;  %v989_v61 = vpack.c.bf16 %v596_v60, %v595_v59  ;;  %v580_v63 = vld [vmem:[%s1757_s27 + $0x48] sm:$0xff]  ;;  %v597_v1 = vld [vmem:[%s1757_s27 + $0xd0] sm:$0xff]  ;;  %v598_v2 = vld [vmem:[%s1757_s27 + $0xd8] sm:$0xff] }
  0xd9   : > { %970 = vmatprep.subr.bf16.mxu1 %v969_v13  ;;  %v991_v0 = vpack.c.bf16 %v580_v63, %v579_v62  ;;  %v993_v3 = vpack.c.bf16 %v598_v2, %v597_v1  ;;  %v581_v4 = vld [vmem:[%s1757_s27 + $0x50] sm:$0xff]  ;;  %v582_v5 = vld [vmem:[%s1757_s27 + $0x58] sm:$0xff]  ;;  %v599_v7 = vld [vmem:[%s1757_s27 + $0xe0] sm:$0xff] }
  0xda   : > { %932 = vmatpush1.bf16.msra.mxu0 %v931_v23  ;;  %v995_v6 = vpack.c.bf16 %v582_v5, %v581_v4  ;;  %v600_v8 = vld [vmem:[%s1757_s27 + $0xe8] sm:$0xff]  ;;  %v583_v10 = vld [vmem:[%s1757_s27 + $0x60] sm:$0xff]  ;;  %v601_v13 = vld [vmem:[%s1757_s27 + $0xf0] sm:$0xff] }
  0xdb   : > { %934 = vmatprep.subr.bf16.mxu0 %v933_v24  ;;  %v997_v9 = vpack.c.bf16 %v600_v8, %v599_v7  ;;  %v584_v11 = vld [vmem:[%s1757_s27 + $0x68] sm:$0xff]  ;;  %v602_v14 = vld [vmem:[%s1757_s27 + $0xf8] sm:$0xff]  ;;  %v585_v16 = vld [vmem:[%s1757_s27 + $0x70] sm:$0xff] }
  0xdc   : > { %972 = vmatpush1.bf16.msra.mxu1 %v971_v22  ;;  %v999_v12 = vpack.c.bf16 %v584_v11, %v583_v10  ;;  %v1001_v15 = vpack.c.bf16 %v602_v14, %v601_v13  ;;  %v586_v17 = vld [vmem:[%s1757_s27 + $0x78] sm:$0xff]  ;;  %v570_v36 = vld [vmem:[#allocation2] sm:$0xff] }
  0xdd   : > { %v1003_v18 = vpack.c.bf16 %v586_v17, %v585_v16 }
  0xde   : > { %936 = vmatpush1.bf16.msra.mxu0 %v935_v30 }
  0xdf   : > { %548 = vmatmul.mubr.f32.vlgmr.msra.gmra.mrb[0].mxu1 %v347_v29  ;;  %938 = vmatprep.subr.bf16.mxu0 %v937_v31 }
  0xe2   : > { %940 = vmatpush1.bf16.msra.mxu0 %v939_v34 }
  0xe3   : > { %974 = vmatprep.subr.bf16.mxu0 %v973_v37 }
  0xe5   : > { %445 = vmatmul.mubr.f32.vlgmr.msra.gmra.mrb[0].mxu0 %v347_v29 }
  0xe6   : > { %976 = vmatpush3.bf16.msra.mxu0 %v975_v40 }
  0xe7   : > { %978 = vmatprep.subr.bf16.mxu0 %v977_v43 }
  0xea   : > { %980 = vmatpush3.bf16.msra.mxu0 %v979_v46 }
  0xeb   : > { %982 = vmatprep.subr.bf16.mxu0 %v981_v49 }
  0xee   : > { %984 = vmatpush3.bf16.msra.mxu0 %v983_v52 }
  0xef   : > { %986 = vmatprep.subr.bf16.mxu0 %v985_v55 }
  0xf2   : > { %988 = vmatpush3.bf16.msra.mxu0 %v987_v58 }
  0xf3   : > { %990 = vmatprep.subr.bf16.mxu0 %v989_v61 }
  0xf6   : > { %992 = vmatpush3.bf16.msra.mxu0 %v991_v0 }
  0xf7   : > { %994 = vmatprep.subr.bf16.mxu0 %v993_v3 }
  0xfa   : > { %996 = vmatpush3.bf16.msra.mxu0 %v995_v6 }
  0xfb   : > { %998 = vmatprep.subr.bf16.mxu0 %v997_v9 }
  0xfe   : > { %1000 = vmatpush3.bf16.msra.mxu0 %v999_v12 }
  0xff   : > { %1002 = vmatprep.subr.bf16.mxu0 %v1001_v15 }
 0x102   : > { %1004 = vmatpush3.bf16.msra.mxu0 %v1003_v18 }
 0x1b2   : > { %v549_v19 = vpop.f32.mrb[0].mxu1 }
 0x1b3   : > { %v864_v20 = vmul.f32 -1.442695, %v549_v19  ;;  %v551_v21 = vpop.f32.mrb[1].mxu1 }
 0x1b4   : > { %v865_v22 = vmul.f32 -1.442695, %v551_v21 }
 0x1b5   : > { %1128 = vpow2.f32 %v864_v20 }
 0x1b6   : > { %1130 = vpow2.f32 %v865_v22 }
 0x1b8   : > { %v446_v23 = vpop.f32.mrb[0].mxu0 }
 0x1b9   : > { %v448_v24 = vpop.f32.mrb[1].mxu0 }
 0x1bf   : > { %v1129_v25 = vpop.eup %1128 }
 0x1c0   : > { %v1131_v26 = vpop.eup %1130  ;;  %v560_v27 = vadd.f32 1.0, %v1129_v25 }
 0x1c1   : > { %v561_v28 = vadd.f32 1.0, %v1131_v26 }
 0x1c2   : > { %1132 = vrcp.f32 %v560_v27 }
 0x1c3   : > { %1134 = vrcp.f32 %v561_v28 }
 0x1cc   : > { %v1133_v29 = vpop.eup %1132 }
 0x1cd   : > { %v1135_v30 = vpop.eup %1134  ;;  %v566_v31 = vmul.f32 %v1133_v29, %v549_v19 }
 0x1ce   : > { %v567_v32 = vmul.f32 %v1135_v30, %v551_v21 }
 0x1cf   : > { %v568_v33 = vmul.f32 %v566_v31, %v446_v23 }
 0x1d0   : > { %v569_v34 = vmul.f32 %v567_v32, %v448_v24 }
 0x1d2   : > { %667 = vmatprep.mubr.f32.mxu0 %v569_v34 }
 0x1d3   : > { %668 = vmatmul.mubr.f32.vlgmr.msra.gmra.mrb[2].mxu0 %v568_v33 }
 0x2a6   : > { %v906_v35 = vpop.f32.mrb[2].mxu0  ;;  %678 = sbr.rel (%p866_p7) target bundleno = 693 (0x2b5), region = 60 }
 0x2a7   : > { %v907_v37 = vpop.f32.mrb[3].mxu0 }
 0x2a8   : > { %v908_v38 = vadd.f32 %v907_v37, %v906_v35 }
 0x2aa   : > { %v673_v39 = vadd.f32 %v908_v38, %v570_v36 }
 0x2ac   : > { %674 = vst [vmem:[#allocation2] sm:$0xff] %v673_v39 }
 0x2b3   : > { %v679_v40 = vld [vmem:[#allocation2] sm:$0xff] }
 0x2b4   : > { %680 = vst [vmem:[%s1763_s30] sm:$0xff] %v679_v40 }
 0x2b5 PF: > { %s1989_s7 = sld [smem:[#allocation18_spill]]  ;;  %s1990_s10 = sld [smem:[#allocation24_spill]] }
 0x2b6   : > { %s1991_s1 = sld [smem:[#allocation28_spill]]  ;;  %s695_s11 = sshll.u32 %s1763_s30, 4  ;;  %s696_s11 = int_to_ptr.vmem [resolvable:$true] %s695_s11 }
 0x2b7   : > { %s682_s5 = scalar_lea.sflag [#allocation5], %s1737_s9  ;;  %s1256_s29 = scalar_lea.vmem %s696_s11, 128 }
 0x2b8   : > { %p1257_p8 = scmp.ne.s32.totalorder %s696_s11, %s1256_s29  ;;  %s1398_s26 = smov [#allocation11]  }
 0x2b9   : > { %s1260_s12 = sshll.u32 %s1398_s26, 4  ;;  %s1261_s12 = int_to_ptr.vmem [resolvable:$false] %s1260_s12 }
 0x2ba   : > { %s1262_s13 = scalar_lea.vmem %s1261_s12, 256  ;;  %p1263_p3 = scmp.lt.s32.totalorder %s696_s11, %s1261_s12 }
 0x2bb   : > { %s868_s8 = sshll.u32 %s1989_s7, 7  ;;  %p1992_p4 = scmp.ne.s32.totalorder %s1990_s10, 0 }
 0x2bc   : > { %s1869_s4 = scalar_lea.hbm %s1991_s1, %s868_s8  ;;  %p1264_p12 = scmp.lt.s32.totalorder %s1262_s13, %s1256_s29 }
 0x2bd   : > { %p1258_p0 = pnand %p1257_p8, %p1992_p4 }
 0x2be   : > { %p1265_p1 = por %p1264_p12, %p1263_p3 }
 0x2bf   : > { %p1259_p6 = pneg %p1258_p0 }
 0x2c1   : > { %p1266_p11 = pnand %p1265_p1, %p1259_p6 }
 0x2c3   : > { %1269 = shalt.err (!%p1266_p11)
}
 0x2c4   : > { %s1270_s9 = scalar_lea.hbm %s1869_s4, 128  ;;  %s1274_s15 = scalar_lea.hbm %s1991_s1, 256 }
 0x2c5   : > { %p1271_p2 = scmp.ne.s32.totalorder %s1869_s4, %s1270_s9  ;;  %p1275_p13 = scmp.lt.u32.totalorder %s1869_s4, %s1991_s1 }
 0x2c6   : > { %p1276_p10 = scmp.lt.u32.totalorder %s1274_s15, %s1270_s9  ;;  %p1278_p8 = scmp.lt.u32.totalorder %s1270_s9, %s1869_s4 }
 0x2c7   : > { %p1272_p9 = pnand %p1271_p2, %p1992_p4 }
 0x2c8   : > { %p1277_p7 = por %p1276_p10, %p1275_p13 }
 0x2c9   : > { %p1273_p5 = pneg %p1272_p9 }
 0x2ca   : > { %p1279_p0 = por %p1278_p8, %p1277_p7 }
 0x2cc   : > { %p1280_p6 = pnand %p1279_p0, %p1273_p5 }
 0x2ce   : > { %1283 = shalt.err (!%p1280_p6)
}
 0x2cf   : > { %1013 = dma.vmem_to_hbm [thread:$0]  (%p1992_p4), %s696_s11, 128, %s1869_s4, %s682_s5  }
 0x2d0 PF: > { %s1993_s27 = sld [smem:[#allocation26_spill]]  ;;  %p1033_p3 = scmp.ge.s32.totalorder %s1386_s25, 2 }
 0x2d1   : > { %s707_s30 = sand.u32 1, %s1358_s18  }
 0x2d2   : > { %s708_s6 = scalar_lea.sflag [#allocation5], %s707_s30 }
 0x2d6   : > { %p1994_p12 = scmp.ne.s32.totalorder %s1993_s27, 0 }
 0x2d8   : > { %p1029_p1 = pnand %p1033_p3, %p1994_p12 }
 0x2da   : > { %1341 = dma.done.wait (!%p1029_p1), %s708_s6, 128  }
 0x2db   : > { %1343 = vsyncadd (!%p1029_p1), %s708_s6, 4294967168  ;;  %s26_s25 = sadd.s32 1, %s1386_s25   ;;  %s1995_s14 = sld [smem:[#allocation22_spill]] }
 0x2dc   : > { %p23_p11 = scmp.ge.s32.totalorder %s26_s25, 6   ;;  %s1996_s7 = sld [smem:[#allocation16_spill]] }
 0x2dd   : > { %s1997_s20 = sld [smem:[#allocation25_spill]]  ;;  %s1998_s21 = sld [smem:[#allocation19_spill]] }
 0x2de   : > { %s1999_s22 = sld [smem:[#allocation20_spill]]  ;;  %s2000_s23 = sld [smem:[#allocation21_spill]] }
 0x2df   : > { %s2001_s24 = sld [smem:[#allocation23_spill]]  ;;  %s2002_s15 = smov %s1350_s16 }
 0x2e0   : > { %s2003_s16 = smov %s1354_s17  ;;  %s2005_s18 = smov %s1362_s19 }
 0x2e1   : > { %s2004_s17 = smov %s1995_s14  ;;  %25 = sbr.rel (!%p23_p11) target bundleno = 16 (0x10), region = 126 }
 0x2e2   : > { %s2006_s19 = smov %s1996_s7 }
 0x2e8   :  { %713 = vsyncpa [#allocation4], 1 }
 0x2e9   :  { %715 = vsyncpa [#allocation4 + $0x1], 1 }
 0x2ea   :  { %716 = vsyncpa [#allocation7], 1 }
 0x2eb   :  { %718 = vsyncpa [#allocation7 + $0x1], 1 }
 0x2ec   :  { %719 = vsyncpa [#allocation10], 1 }
 0x2ed   :  { %721 = vsyncpa [#allocation10 + $0x1], 1 }
 0x2ee   :  { %722 = vsyncpa [#allocation5], 1 }
 0x2ef   :  { %724 = vsyncpa [#allocation5 + $0x1], 1 }

</bundles_post_ra>
